<compile_context>
chip_gen: v6e
topology: v6e:2x2x1
jax: 0.10.0
libtpu: 0.0.40
codegen_flags: <defaults>
</compile_context>

<pallas_src>
import jax
import jax.numpy as jnp
from jax import lax
from jax.experimental import pallas as pl
from jax.experimental.pallas import tpu as pltpu

LANE = 128
GROUP_BYTES = 4096                       # one (sub, 128) row-group is always 4 KiB raw
BLOCK_BYTES = 4 * 1024 * 1024            # 4 MiB per input block (~8 MiB double-buffered)
MAX_BLOCK_GROUPS = BLOCK_BYTES // GROUP_BYTES   # 1024
GSTEP = 8                                # row-groups reduced per inner-loop step
SMALL_N = 1 << 16                        # below this, jnp.min/max beats the launch cost
EPS_F32 = float(jnp.finfo(jnp.float32).eps)


def _round_up(a, b):
    return ((a + b - 1) // b) * b


# ------------------------------ aminmax kernel -------------------------------
def aminmax(x, *, force_pallas=False, block_groups=None):
    """Global (min, max) of x as two (1,) float32 arrays (== torch.aminmax(x.float()))."""
    n = int(x.size)
    if n == 0:
        # TODO(synk): torch.aminmax errors on empty tensors; forward() guards this case.
        return (jnp.full((1,), jnp.inf, jnp.float32),
                jnp.full((1,), -jnp.inf, jnp.float32))

    # Small tensors: XLA's fused reduction beats pad/reshape/launch overhead.
    if (not force_pallas) and n < SMALL_N:
        xf = x.astype(jnp.float32)
        return jnp.min(xf).reshape(1), jnp.max(xf).reshape(1)

    # Native-dtype loads when possible (halves HBM traffic for bf16, 4x for int8).
    dt = x.dtype
    ok_native = ((jnp.issubdtype(dt, jnp.floating) or jnp.issubdtype(dt, jnp.integer))
                 and dt.itemsize in (1, 2, 4))
    if not ok_native:
        x = x.astype(jnp.float32)
        dt = x.dtype
    itemsize = dt.itemsize
    sub = 32 // itemsize                 # packed sublane group: 8 f32 / 16 bf16 / 32 int8
    group = sub * LANE                   # elements per (sub, 128) row-group (4 KiB)

    x_flat = x.reshape(-1)               # free for contiguous inputs
    n_pad = (-n) % group
    if n_pad:
        # Only sizes unaligned to one 4 KiB row-group pay this copy; padded zeros
        # are masked out in the last block via rem_last below.
        x_flat = jnp.pad(x_flat, (0, n_pad))
    n_groups = (n + n_pad) // group
    x3d = x_flat.reshape(n_groups, sub, LANE)   # free reshape

    max_bg = block_groups if block_groups is not None else MAX_BLOCK_GROUPS
    bg = min(max_bg, n_groups)                  # row-groups per DMA block
    gstep = min(GSTEP, bg)                      # row-groups per inner compute step
    inner_steps = pl.cdiv(bg, gstep)
    n_blocks = pl.cdiv(n_groups, bg)
    block_elems = bg * group
    last_block = n_blocks - 1
    rem_last = n - last_block * block_elems     # valid elements in the last block
    needs_mask = rem_last < block_elems
    unmasked_limit = last_block + (0 if needs_mask else 1)

    # Unconditional 2-way chunk split: feeds both v7x TensorCores; a free serial
    # outer loop on single-core v5e/v6e.  Phantom tiles (blk > last_block) read the
    # clamped last block and contribute nothing.
    n_chunks = 2
    tiles_per_chunk = pl.cdiv(n_blocks, n_chunks)

    def kernel(x_ref, min_ref, max_ref, min_acc, max_acc):
        t = pl.program_id(1)
        blk = pl.program_id(0) * tiles_per_chunk + t

        @pl.when(t == 0)
        def _():
            min_acc[...] = jnp.full_like(min_acc, jnp.inf)
            max_acc[...] = jnp.full_like(max_acc, -jnp.inf)

        def load_step(s):
            # Clamp so a non-divisible block tail overlaps previously-seen groups
            # (harmless for min/max) instead of reading out of bounds.
            start = jnp.minimum(s * gstep, bg - gstep)
            xs = x_ref[pl.ds(start, gstep)].astype(jnp.float32)   # (gstep, sub, LANE)
            return start, xs

        @pl.when(blk < unmasked_limit)
        def _():
            def body(s, carry):
                _, xs = load_step(s)
                # axis-0 reduce = pure elementwise VPU chain, no XLU in the hot loop
                min_acc[...] = jnp.minimum(min_acc[...], jnp.min(xs, axis=0))
                max_acc[...] = jnp.maximum(max_acc[...], jnp.max(xs, axis=0))
                return carry
            lax.fori_loop(0, inner_steps, body, 0)

        if needs_mask:
            @pl.when(blk == last_block)
            def _():
                shape = (gstep, sub, LANE)
                idx0 = (lax.broadcasted_iota(jnp.int32, shape, 0) * group
                        + lax.broadcasted_iota(jnp.int32, shape, 1) * LANE
                        + lax.broadcasted_iota(jnp.int32, shape, 2))

                def body(s, carry):
                    start, xs = load_step(s)
                    valid = idx0 < (rem_last - start * group)
                    min_acc[...] = jnp.minimum(
                        min_acc[...],
                        jnp.min(jnp.where(valid, xs, jnp.inf), axis=0))
                    max_acc[...] = jnp.maximum(
                        max_acc[...],
                        jnp.max(jnp.where(valid, xs, -jnp.inf), axis=0))
                    return carry
                lax.fori_loop(0, inner_steps, body, 0)

        @pl.when(t == tiles_per_chunk - 1)
        def _():
            # one cross-sublane reduce per chunk, hidden under the last block's DMA;
            # full-lane (1,1,128) store keeps the output write unmasked.
            min_ref[...] = jnp.min(min_acc[...], axis=0, keepdims=True).reshape(1, 1, LANE)
            max_ref[...] = jnp.max(max_acc[...], axis=0, keepdims=True).reshape(1, 1, LANE)

    def in_map(c, t):
        blk = c * tiles_per_chunk + t
        return (jnp.minimum(blk, last_block), 0, 0)   # clamp the phantom tile

    min_o, max_o = pl.pallas_call(
        kernel,
        out_shape=(jax.ShapeDtypeStruct((n_chunks, 1, LANE), jnp.float32),
                   jax.ShapeDtypeStruct((n_chunks, 1, LANE), jnp.float32)),
        grid_spec=pltpu.PrefetchScalarGridSpec(
            num_scalar_prefetch=0,
            grid=(n_chunks, tiles_per_chunk),
            in_specs=[pl.BlockSpec((bg, sub, LANE), in_map)],
            out_specs=(pl.BlockSpec((1, 1, LANE), lambda c, t: (c, 0, 0)),
                       pl.BlockSpec((1, 1, LANE), lambda c, t: (c, 0, 0))),
            scratch_shapes=[pltpu.VMEM((sub, LANE), jnp.float32),
                            pltpu.VMEM((sub, LANE), jnp.float32)]),
        compiler_params=pltpu.CompilerParams(
            dimension_semantics=("parallel", "arbitrary")),
        cost_estimate=pl.CostEstimate(flops=2 * n, transcendentals=0,
                                      bytes_accessed=n * itemsize),
    )(x3d)

    # tiny cross-lane + cross-chunk reduce of the (2,1,128) partials
    x_min = jnp.min(min_o).reshape(1)
    x_max = jnp.max(max_o).reshape(1)
    return x_min, x_max


# ------------------------------ Observer module ------------------------------
class ClipObserver:
    """Pallas-TPU ClipObserver (per_tensor_symmetric, qint8)."""

    def __init__(self, xmin=-1.0, xmax=1.0, averaging_constant=1.0, ch_axis=-1,
                 quant_min=-128, quant_max=127, pow_quantization=False):
        assert xmin <= xmax, "xmin must less than or equal to xmax."
        assert ch_axis < 0, "only per_tensor_symmetric (ch_axis < 0) is implemented"
        self.setted_min = float(xmin)
        self.setted_max = float(xmax)
        self.averaging_constant = float(averaging_constant)
        self.quant_min = quant_min
        self.quant_max = quant_max
        self.pow_quantization = pow_quantization
        self.eps = EPS_F32
        self.min_val = jnp.zeros((0,), jnp.float32)   # empty buffers, like torch
        self.max_val = jnp.zeros((0,), jnp.float32)

    def forward(self, x_orig):
        if x_orig.size == 0:
            return x_orig
        min_cur, max_cur = aminmax(x_orig)
        if self.min_val.size == 0 or self.max_val.size == 0:
            min_val, max_val = min_cur, max_cur
        else:
            min_val = self.min_val + self.averaging_constant * (min_cur - self.min_val)
            max_val = self.max_val + self.averaging_constant * (max_cur - self.max_val)
        # torch: min_val.clamp_min_(setted_min); max_val.clamp_max_(setted_max)
        self.min_val = jnp.maximum(min_val, self.setted_min)
        self.max_val = jnp.minimum(max_val, self.setted_max)
        return x_orig

    __call__ = forward

    def calculate_qparams(self):
        if self.min_val.size == 0 or self.max_val.size == 0:
            return jnp.array([1.0], jnp.float32), jnp.array([0], jnp.int32)
        scale = jnp.maximum(jnp.maximum(-self.min_val, self.max_val), 0.0)
        scale = scale / (float(self.quant_max - self.quant_min) / 2.0)
        scale = jnp.maximum(scale, self.eps)
        if self.pow_quantization:
            scale = 1.0 / jnp.exp2(jnp.clip(jnp.floor(-jnp.log2(scale)), 1.0, 14.0))
        return scale, None


# ------------------------------------ main ------------------------------------
if __name__ == "__main__":
    key = jax.random.PRNGKey(0)
    # layout: NCHW, same as the PyTorch module's conv-activation inputs.
    x = jax.random.normal(key, (2, 4, 16, 16), dtype=jnp.float32) * 2.5

    # default ClipObserver: xmin=-1, xmax=1, averaging_constant=1.0
    obs = ClipObserver()
    y = obs(x)            # first call -> direct-assignment path
    y = obs(x)            # second call -> moving-average path
    jax.block_until_ready((y, obs.min_val, obs.max_val))

    ref_min, ref_max = jnp.min(x), jnp.max(x)
    assert jnp.allclose(obs.min_val, jnp.maximum(ref_min, -1.0).reshape(1)), "min clip mismatch"
    assert jnp.allclose(obs.max_val, jnp.minimum(ref_max, 1.0).reshape(1)), "max clip mismatch"
    assert y is x

    # wide clip bounds: buffers carry the raw aminmax of the tensor
    obs2 = ClipObserver(xmin=-100.0, xmax=100.0)
    obs2(x)
    jax.block_until_ready((obs2.min_val, obs2.max_val))
    assert jnp.allclose(obs2.min_val, ref_min.reshape(1)), "raw min mismatch"
    assert jnp.allclose(obs2.max_val, ref_max.reshape(1)), "raw max mismatch"

    # 1) force the Pallas kernel on the module-sized input (aligned, single block)
    pmin, pmax = aminmax(x, force_pallas=True)
    jax.block_until_ready((pmin, pmax))
    assert jnp.allclose(pmin[0], ref_min) and jnp.allclose(pmax[0], ref_max), "pallas small mismatch"

    # 2) ragged, group-unaligned size -> small pad + masked last tile
    z = jax.random.normal(jax.random.PRNGKey(1), (3, 5, 7, 11), dtype=jnp.float32) + 0.3
    zmin, zmax = aminmax(z, force_pallas=True)
    jax.block_until_ready((zmin, zmax))
    assert jnp.allclose(zmin[0], jnp.min(z)) and jnp.allclose(zmax[0], jnp.max(z)), "masked-tile mismatch"

    # 3) native bf16 loads (no wrapper-side f32 cast / extra HBM pass)
    w = jax.random.normal(jax.random.PRNGKey(2), (4, 64, 32, 32), dtype=jnp.bfloat16) * 1.5
    wmin, wmax = aminmax(w)          # 262144 elems -> Pallas path by default
    jax.block_until_ready((wmin, wmax))
    wf = w.astype(jnp.float32)
    assert jnp.allclose(wmin[0], jnp.min(wf)) and jnp.allclose(wmax[0], jnp.max(wf)), "bf16 mismatch"

    # 4) multi-block grid: both chunks active, partial (masked) edge block,
    #    accumulation across the "arbitrary" axis
    v = jax.random.normal(jax.random.PRNGKey(3), (2, 300, 129), dtype=jnp.float32) - 0.1
    vmin, vmax = aminmax(v, block_groups=8)
    jax.block_until_ready((vmin, vmax))
    assert jnp.allclose(vmin[0], jnp.min(v)) and jnp.allclose(vmax[0], jnp.max(v)), "multi-block mismatch"

    scale, _ = obs.calculate_qparams()
    jax.block_until_ready(scale)
    print("KERNEL_OK")
</pallas_src>

<mosaic_0001>
module attributes {stable_mosaic.version = 11 : i64} {
  func.func @kernel(%arg0: i32, %arg1: i32, %arg2: memref<2x8x128xf32, #tpu.memory_space<vmem>>, %arg3: memref<1x1x128xf32, #tpu.memory_space<vmem>>, %arg4: memref<1x1x128xf32, #tpu.memory_space<vmem>>, %arg5: memref<8x128xf32, #tpu.memory_space<vmem>>, %arg6: memref<8x128xf32, #tpu.memory_space<vmem>>) attributes {dimension_semantics = [#tpu.dimension_semantics<parallel>, #tpu.dimension_semantics<arbitrary>], iteration_bounds = array<i64: 2, 1>, scalar_prefetch = 0 : i64, scratch_operands = 2 : i64, tpu.core_type = #tpu.core_type<tc>, window_params = [{transform_indices = @transform_0, window_bounds = array<i64: 2, 8, 128>}, {transform_indices = @transform_1, window_bounds = array<i64: 1, 1, 128>}, {transform_indices = @transform_2, window_bounds = array<i64: 1, 1, 128>}]} {
    %c1_i32 = arith.constant 1 : i32
    %0 = arith.muli %arg0, %c1_i32 : i32
    %1 = arith.addi %0, %arg1 : i32
    %c0_i32 = arith.constant 0 : i32
    %2 = arith.cmpi eq, %arg1, %c0_i32 : i32
    %3 = arith.extui %2 : i1 to i32
    %c0_i32_0 = arith.constant 0 : i32
    %4 = arith.cmpi ne, %3, %c0_i32_0 : i32
    scf.if %4 {
      %cst = arith.constant 0x7F800000 : f32
      %11 = vector.broadcast %cst : f32 to vector<8x128xf32>
      %c0 = arith.constant 0 : index
      %c0_5 = arith.constant 0 : index
      %12 = vector.load %arg5[%c0, %c0_5] : memref<8x128xf32, #tpu.memory_space<vmem>>, vector<8x128xf32>
      tpu.vector_store %arg5[%c0, %c0_5], %11 {strides = array<i32>} : memref<8x128xf32, #tpu.memory_space<vmem>>, vector<8x128xf32>,
      %cst_6 = arith.constant 0xFF800000 : f32
      %13 = vector.broadcast %cst_6 : f32 to vector<8x128xf32>
      %c0_7 = arith.constant 0 : index
      %c0_8 = arith.constant 0 : index
      %14 = vector.load %arg6[%c0_7, %c0_8] : memref<8x128xf32, #tpu.memory_space<vmem>>, vector<8x128xf32>
      tpu.vector_store %arg6[%c0_7, %c0_8], %13 {strides = array<i32>} : memref<8x128xf32, #tpu.memory_space<vmem>>, vector<8x128xf32>,
    } else {
    }
    %c1_i32_1 = arith.constant 1 : i32
    %5 = arith.cmpi slt, %1, %c1_i32_1 : i32
    %6 = arith.extui %5 : i1 to i32
    %c0_i32_2 = arith.constant 0 : i32
    %7 = arith.cmpi ne, %6, %c0_i32_2 : i32
    scf.if %7 {
      %c0_i32_5 = arith.constant 0 : i32
      %c2_i32 = arith.constant 2 : i32
      %11 = arith.muli %c0_i32_5, %c2_i32 : i32
      %c0_i32_6 = arith.constant 0 : i32
      %12 = arith.minsi %11, %c0_i32_6 : i32
      %13 = arith.index_cast %12 : i32 to index
      %c0 = arith.constant 0 : index
      %c0_7 = arith.constant 0 : index
      %14 = vector.load %arg2[%13, %c0, %c0_7] : memref<2x8x128xf32, #tpu.memory_space<vmem>>, vector<2x8x128xf32>
      %c0_8 = arith.constant 0 : index
      %c0_9 = arith.constant 0 : index
      %15 = vector.load %arg5[%c0_8, %c0_9] : memref<8x128xf32, #tpu.memory_space<vmem>>, vector<8x128xf32>
      %cst = arith.constant dense<0x7F800000> : vector<8x128xf32>
      %16 = vector.multi_reduction <minimumf>, %14, %cst [0] : vector<2x8x128xf32> to vector<8x128xf32>
      %17 = arith.minimumf %15, %16 : vector<8x128xf32>
      %c0_10 = arith.constant 0 : index
      %c0_11 = arith.constant 0 : index
      %18 = vector.load %arg5[%c0_10, %c0_11] : memref<8x128xf32, #tpu.memory_space<vmem>>, vector<8x128xf32>
      tpu.vector_store %arg5[%c0_10, %c0_11], %17 {strides = array<i32>} : memref<8x128xf32, #tpu.memory_space<vmem>>, vector<8x128xf32>,
      %c0_12 = arith.constant 0 : index
      %c0_13 = arith.constant 0 : index
      %19 = vector.load %arg6[%c0_12, %c0_13] : memref<8x128xf32, #tpu.memory_space<vmem>>, vector<8x128xf32>
      %cst_14 = arith.constant dense<0xFF800000> : vector<8x128xf32>
      %20 = vector.multi_reduction <maximumf>, %14, %cst_14 [0] : vector<2x8x128xf32> to vector<8x128xf32>
      %21 = arith.maximumf %19, %20 : vector<8x128xf32>
      %c0_15 = arith.constant 0 : index
      %c0_16 = arith.constant 0 : index
      %22 = vector.load %arg6[%c0_15, %c0_16] : memref<8x128xf32, #tpu.memory_space<vmem>>, vector<8x128xf32>
      tpu.vector_store %arg6[%c0_15, %c0_16], %21 {strides = array<i32>} : memref<8x128xf32, #tpu.memory_space<vmem>>, vector<8x128xf32>,
      %c1_i32_17 = arith.constant 1 : i32
    } else {
    }
    %c0_i32_3 = arith.constant 0 : i32
    %8 = arith.cmpi eq, %arg1, %c0_i32_3 : i32
    %9 = arith.extui %8 : i1 to i32
    %c0_i32_4 = arith.constant 0 : i32
    %10 = arith.cmpi ne, %9, %c0_i32_4 : i32
    scf.if %10 {
      %c0 = arith.constant 0 : index
      %c0_5 = arith.constant 0 : index
      %11 = vector.load %arg5[%c0, %c0_5] : memref<8x128xf32, #tpu.memory_space<vmem>>, vector<8x128xf32>
      %cst = arith.constant dense<0x7F800000> : vector<128xf32>
      %12 = vector.multi_reduction <minimumf>, %11, %cst [0] : vector<8x128xf32> to vector<128xf32>
      %13 = vector.shape_cast %12 : vector<128xf32> to vector<1x128xf32>
      %14 = vector.shape_cast %13 : vector<1x128xf32> to vector<1x1x128xf32>
      %c0_6 = arith.constant 0 : index
      %c0_7 = arith.constant 0 : index
      %c0_8 = arith.constant 0 : index
      %15 = vector.load %arg3[%c0_6, %c0_7, %c0_8] : memref<1x1x128xf32, #tpu.memory_space<vmem>>, vector<1x1x128xf32>
      tpu.vector_store %arg3[%c0_6, %c0_7, %c0_8], %14 {strides = array<i32>} : memref<1x1x128xf32, #tpu.memory_space<vmem>>, vector<1x1x128xf32>,
      %c0_9 = arith.constant 0 : index
      %c0_10 = arith.constant 0 : index
      %16 = vector.load %arg6[%c0_9, %c0_10] : memref<8x128xf32, #tpu.memory_space<vmem>>, vector<8x128xf32>
      %cst_11 = arith.constant dense<0xFF800000> : vector<128xf32>
      %17 = vector.multi_reduction <maximumf>, %16, %cst_11 [0] : vector<8x128xf32> to vector<128xf32>
      %18 = vector.shape_cast %17 : vector<128xf32> to vector<1x128xf32>
      %19 = vector.shape_cast %18 : vector<1x128xf32> to vector<1x1x128xf32>
      %c0_12 = arith.constant 0 : index
      %c0_13 = arith.constant 0 : index
      %c0_14 = arith.constant 0 : index
      %20 = vector.load %arg4[%c0_12, %c0_13, %c0_14] : memref<1x1x128xf32, #tpu.memory_space<vmem>>, vector<1x1x128xf32>
      tpu.vector_store %arg4[%c0_12, %c0_13, %c0_14], %19 {strides = array<i32>} : memref<1x1x128xf32, #tpu.memory_space<vmem>>, vector<1x1x128xf32>,
    } else {
    }
    return
  }
  func.func @transform_0(%arg0: i32, %arg1: i32) -> (i32, i32, i32) {
    %c1_i32 = arith.constant 1 : i32
    %0 = arith.muli %arg0, %c1_i32 : i32
    %1 = arith.addi %0, %arg1 : i32
    %c0_i32 = arith.constant 0 : i32
    %2 = arith.minsi %1, %c0_i32 : i32
    %c0_i32_0 = arith.constant 0 : i32
    %c0_i32_1 = arith.constant 0 : i32
    %c0_i32_2 = arith.constant 0 : i32
    return %2, %c0_i32_0, %c0_i32_1 : i32, i32, i32
  }
  func.func @transform_1(%arg0: i32, %arg1: i32) -> (i32, i32, i32) {
    %c0_i32 = arith.constant 0 : i32
    %c0_i32_0 = arith.constant 0 : i32
    %c0_i32_1 = arith.constant 0 : i32
    return %arg0, %c0_i32, %c0_i32_0 : i32, i32, i32
  }
  func.func @transform_2(%arg0: i32, %arg1: i32) -> (i32, i32, i32) {
    %c0_i32 = arith.constant 0 : i32
    %c0_i32_0 = arith.constant 0 : i32
    %c0_i32_1 = arith.constant 0 : i32
    return %arg0, %c0_i32, %c0_i32_0 : i32, i32, i32
  }
}

</mosaic_0001>

<bundles_post_ra>
// kernel: tpu_custom_call.1
= control target key start
LH: loop header
LB: loop body
LE: loop exit
PB: predicated region body
PF: predicated region fallthrough
CT: control target
= control target key end

     0   :  { %8 = vsyncpa [#allocation5], 0  ;;  %s860_s0 = inlined_call_operand.hbm [shape: f32[2,8,128], index: 0, kind: input, shape index: {}]   ;;  %s861_s1 = inlined_call_operand.hbm [shape: f32[2,1,128], index: 1, kind: output, shape index: {0}]   ;;  %s862_s2 = inlined_call_operand.hbm [shape: f32[2,1,128], index: 2, kind: output, shape index: {1}]  }
   0x1   :  { %10 = vsyncpa [#allocation5 + $0x1], 0 }
   0x2   :  { %11 = vsyncpa [#allocation6], 0 }
   0x3   :  { %13 = vsyncpa [#allocation6 + $0x1], 0 }
   0x4   :  { %14 = vsyncpa [#allocation9], 0 }
   0x5   :  { %16 = vsyncpa [#allocation9 + $0x1], 0  ;;  %s661_s9 = smov 0   ;;  %s663_s10 = smov 0  }
   0x6   :  { %s665_s11 = smov 0   ;;  %s667_s12 = smov 0  }
   0x7   :  { %s669_s13 = smov 0   ;;  %s671_s14 = smov 0  }
   0x8   :  { %s673_s15 = smov 0   ;;  %s675_s16 = smov 0  }
   0x9 LB: > { %s368_s17 = sadd.s32 4294967295, %s637_s16   ;;  %s369_s18 = sadd.s32 4294967294, %s637_s16   ;;  %s637_s16 = sphi %s675_s16, %s22_s16   ;;  %s633_s15 = sphi %s673_s15, %s879_s15   ;;  %s629_s14 = sphi %s671_s14, %s878_s14   ;;  %s625_s13 = sphi %s669_s13, %s850_s13   ;;  %s621_s12 = sphi %s667_s12, %s877_s12   ;;  %s617_s11 = sphi %s665_s11, %s876_s11   ;;  %s613_s10 = sphi %s663_s10, %s875_s10   ;;  %s609_s9 = sphi %s661_s9, %s874_s9  }
   0xa   : > { %s34_s19 = sadd.s32 1, %s633_s15  ;;  %p606_p1 = scmp.ne.s32.totalorder %s625_s13, 0 }
   0xb   : > { %p36_p0 = scmp.ge.s32.totalorder %s34_s19, 2  ;;  %p55_p2 = scmp.eq.s32.totalorder %s637_s16, 0 }
   0xc   : > { %p60_p3 = scmp.ne.s32.totalorder %s625_s13, %s621_s12  ;;  %p61_p5 = scmp.eq.s32.totalorder %s368_s17, 0 }
   0xd   : > { %s881_s19 = smov (%p36_p0, %s34_s19), 0  ;;  %p707_p4 = por %p606_p1, %p55_p2 }
   0xe   : > { %p711_p6 = por %p61_p5, %p60_p3  ;;  %s70_s22 = ssub.s32 %s633_s15, %s881_s19 }
   0xf   : > { %p71_p7 = scmp.eq.s32.totalorder %s70_s22, 0  ;;  %s73_s23 = sadd.s32 1, %s617_s11 }
  0x10   : > { %s866_s21 = scalar_select %p711_p6, 1, 0 }
  0x11   : > { %s719_s24 = scalar_select %p71_p7, %s617_s11, %s73_s23  }
  0x12   : > { %p83_p8 = scmp.ne.s32.totalorder %s617_s11, %s613_s10  ;;  %p84_p9 = scmp.eq.s32.totalorder %s368_s17, 1 }
  0x13   : > { %p89_p10 = scmp.ne.s32.totalorder %s613_s10, %s609_s9  ;;  %p90_p11 = scmp.eq.s32.totalorder %s369_s18, 1 }
  0x14   : > { %p725_p12 = por %p84_p9, %p83_p8  ;;  %p400_p1 = scmp.lt.s32.totalorder %s637_s16, 2 }
  0x15   : > { %p730_p0 = por %p90_p11, %p89_p10  ;;  %s639_s27 = smov [#allocation4]  }
  0x16   : > { %s867_s25 = scalar_select %p725_p12, 1, 0 }
  0x17   : > { %s868_s26 = scalar_select %p730_p0, 1, 0 }
  0x18   : > { %s150_s28 = sshll.u32 %s639_s27, 4  ;;  %p737_p2 = pnand %p400_p1, %p707_p4  ;;  %s151_s28 = int_to_ptr.vmem [resolvable:$true] %s150_s28 }
  0x19   : > { %s478_s4 = scalar_lea.hbm %s860_s0, 256 }
  0x1a   : > { %p479_p3 = scmp.ne.s32.totalorder %s860_s0, %s478_s4  ;;  %p480_p5 = pneg %p737_p2 }
  0x1b   : > { %p485_p9 = scmp.lt.s32.totalorder %s478_s4, %s478_s4 }
  0x1c   : > { %p481_p7 = pnand %p480_p5, %p479_p3 }
  0x1e   : > { %p482_p8 = pneg %p481_p7 }
  0x20   : > { %p487_p10 = pnand %p485_p9, %p482_p8 }
  0x22   : > { %490 = shalt.err (!%p487_p10)
}
  0x23   : > { %s491_s7 = scalar_lea.vmem %s151_s28, 256  ;;  %s498_s8 = scalar_lea.vmem %s151_s28, 512 }
  0x24   : > { %p492_p4 = scmp.ne.s32.totalorder %s151_s28, %s491_s7  ;;  %p499_p13 = scmp.lt.s32.totalorder %s151_s28, %s151_s28 }
  0x25   : > { %p500_p0 = scmp.lt.s32.totalorder %s498_s8, %s491_s7 }
  0x26   : > { %p494_p11 = pnand %p492_p4, %p480_p5 }
  0x27   : > { %p501_p12 = por %p500_p0, %p499_p13 }
  0x28   : > { %p495_p1 = pneg %p494_p11 }
  0x2a   : > { %p502_p6 = pnand %p501_p12, %p495_p1 }
  0x2c   : > { %505 = shalt.err (!%p502_p6)
}
  0x2d   : > { %s640_s12 = smov 128   ;;  %s641_s17 = smov 8  }
  0x2e   : > { %392 = dma.hbm_to_vmem [thread:$0]  (!%p737_p2), %s860_s0, 256, %s151_s28, [#allocation5], %s640_s12, %s640_s12, %s641_s17  }
  0x2f   : > { %p375_p3 = scmp.ge.s32.totalorder %s637_s16, 1  ;;  %p158_p7 = scmp.lt.s32.totalorder %s637_s16, 3 }
  0x31   : > { %p159_p5 = pnand %p375_p3, %p158_p7 }
  0x32   : > { %s164_s22 = sand.u32 (!%p159_p5), 1, %s625_s13   ;;  %p870_p6 = scmp.ne.s32.totalorder (!%p159_p5), %s866_s21, 0 }
  0x33   : > { %162 = sbr.rel (%p159_p5) target bundleno = 124 (0x7c), region = 24  ;;  %s376_s23 = sshll.u32 (!%p159_p5), %s164_s22, 4 }
  0x34   : > { %s165_s27 = scalar_lea.sflag (!%p159_p5), [#allocation5], %s164_s22  ;;  %s168_s30 = scalar_lea.vmem (!%p159_p5), [#allocation4], %s376_s23 }
  0x38   : > { %595 = dma.done.wait (%p870_p6), %s165_s27, 256  }
  0x39   : > { %597 = vsyncadd (%p870_p6), %s165_s27, 4294967040  ;;  %s762_s29 = sand.u32 1, %s613_s10   ;;  %v642_v0 = vmov inf   ;;  %v643_v1 = vmov -inf   ;;  %p377_p12 = scmp.ge.s32.totalorder %s629_s14, 1 }
  0x3a   : > { %201 = vst [vmem:[#allocation2] sm:$0xff] %v642_v0  ;;  %202 = vst [vmem:[#allocation3] sm:$0xff] %v643_v1  ;;  %s185_s28 = scalar_lea.vmem [#allocation7], %s762_s29  ;;  %s191_s3 = scalar_lea.vmem [#allocation8], %s762_s29 }
  0x3b   : > { %206 = sbr.rel (%p377_p12) target bundleno = 70 (0x46), region = 36 }
  0x40   : > { %v207_v2 = vld [vmem:[%s168_s30] sm:$0xff]  ;;  %v208_v3 = vld [vmem:[%s168_s30 + $0x8] sm:$0xff] }
  0x41   : > { %v209_v4 = vld [vmem:[#allocation2] sm:$0xff]  ;;  %v210_v5 = vmin.f32 %v207_v2, %v208_v3  ;;  %v213_v6 = vld [vmem:[#allocation3] sm:$0xff]  ;;  %v214_v7 = vmax.f32 %v207_v2, %v208_v3 }
  0x43   : > { %v211_v8 = vmin.f32 %v209_v4, %v210_v5  ;;  %v215_v9 = vmax.f32 %v213_v6, %v214_v7 }
  0x45   : > { %212 = vst [vmem:[#allocation2] sm:$0xff] %v211_v8  ;;  %216 = vst [vmem:[#allocation3] sm:$0xff] %v215_v9 }
  0x46 PF: > { %s378_s21 = sshll.u32 %s629_s14, 4  ;;  %s253_s4 = sshll.u32 %s185_s28, 4  ;;  %s777_s4 = int_to_ptr.vmem [resolvable:$true] %s253_s4 }
  0x47   : > { %s266_s5 = sshll.u32 %s191_s3, 4  ;;  %s775_s8 = scalar_lea.hbm %s861_s1, %s378_s21  ;;  %s784_s5 = int_to_ptr.vmem [resolvable:$true] %s266_s5 }
  0x48   : > { %s782_s14 = scalar_lea.hbm %s862_s2, %s378_s21  ;;  %s237_s18 = scalar_lea.sflag [#allocation6], %s762_s29 }
  0x49   : > { %s506_s20 = scalar_lea.vmem %s777_s4, 16  ;;  %p871_p0 = scmp.ne.s32.totalorder %s867_s25, 0 }
  0x4a   : > { %p507_p13 = scmp.ne.s32.totalorder %s777_s4, %s506_s20  ;;  %s644_s22 = smov [#allocation7]  }
  0x4b   : > { %s510_s23 = sshll.u32 %s644_s22, 4  ;;  %s511_s23 = int_to_ptr.vmem [resolvable:$false] %s510_s23 }
  0x4c   : > { %v220_v10 = vld [vmem:[#allocation2] sm:$0xff]  ;;  %v228_v11 = vld [vmem:[#allocation3] sm:$0xff]  ;;  %p508_p2 = pnand %p507_p13, %p871_p0  ;;  %s512_s27 = scalar_lea.vmem %s511_s23, 32 }
  0x4d   : > { %v221_v12 = vrot.slane %v220_v10, 4  ;;  %v229_v13 = vrot.slane %v228_v11, 4  ;;  %p513_p9 = scmp.lt.s32.totalorder %s777_s4, %s511_s23  ;;  %p514_p10 = scmp.lt.s32.totalorder %s512_s27, %s506_s20 }
  0x4e   : > { %p509_p8 = pneg %p508_p2 }
  0x4f   : > { %v222_v14 = vmin.f32 %v220_v10, %v221_v12  ;;  %v230_v15 = vmax.f32 %v228_v11, %v229_v13  ;;  %p515_p4 = por %p514_p10, %p513_p9 }
  0x51   : > { %v223_v16 = vrot.slane %v222_v14, 2  ;;  %v231_v17 = vrot.slane %v230_v15, 2  ;;  %p516_p11 = pnand %p515_p4, %p509_p8 }
  0x53   : > { %v224_v18 = vmin.f32 %v222_v14, %v223_v16  ;;  %v232_v19 = vmax.f32 %v230_v15, %v231_v17 }
  0x55   : > { %v225_v20 = vrot.slane %v224_v18, 1  ;;  %v233_v21 = vrot.slane %v232_v19, 1 }
  0x57   : > { %v226_v22 = vmin.f32 %v224_v18, %v225_v20  ;;  %v234_v23 = vmax.f32 %v232_v19, %v233_v21 }
  0x59   : > { %227 = vst [vmem:[%s185_s28] sm:$0x1] %v226_v22  ;;  %235 = vst [vmem:[%s191_s3] sm:$0x1] %v234_v23 }
  0x5a   : > { %519 = shalt.err (!%p516_p11)
}
  0x5b   : > { %s520_s30 = scalar_lea.hbm %s775_s8, 16  ;;  %s524_s21 = scalar_lea.hbm %s861_s1, 32 }
  0x5c   : > { %p521_p1 = scmp.ne.s32.totalorder %s775_s8, %s520_s30  ;;  %p525_p5 = scmp.lt.s32.totalorder %s775_s8, %s861_s1 }
  0x5d   : > { %p526_p6 = scmp.lt.s32.totalorder %s524_s21, %s520_s30 }
  0x5e   : > { %p522_p3 = pnand %p521_p1, %p871_p0 }
  0x5f   : > { %p527_p12 = por %p526_p6, %p525_p5 }
  0x60   : > { %p523_p7 = pneg %p522_p3 }
  0x62   : > { %p528_p13 = pnand %p527_p12, %p523_p7 }
  0x64   : > { %531 = shalt.err (!%p528_p13)
}
  0x65   : > { %385 = dma.vmem_to_hbm [thread:$0]  (%p871_p0), %s777_s4, 16, %s775_s8, %s237_s18  }
  0x66   : > { %s241_s12 = scalar_lea.sflag [#allocation9], %s762_s29  ;;  %s532_s17 = scalar_lea.vmem %s784_s5, 16 }
  0x67   : > { %p533_p2 = scmp.ne.s32.totalorder %s784_s5, %s532_s17  ;;  %s645_s20 = smov [#allocation8]  }
  0x68   : > { %s536_s22 = sshll.u32 %s645_s20, 4  ;;  %s537_s22 = int_to_ptr.vmem [resolvable:$false] %s536_s22 }
  0x69   : > { %p534_p8 = pnand %p533_p2, %p871_p0  ;;  %s538_s23 = scalar_lea.vmem %s537_s22, 32 }
  0x6a   : > { %p539_p10 = scmp.lt.s32.totalorder %s784_s5, %s537_s22  ;;  %p540_p4 = scmp.lt.s32.totalorder %s538_s23, %s532_s17 }
  0x6b   : > { %p535_p9 = pneg %p534_p8 }
  0x6c   : > { %p541_p11 = por %p540_p4, %p539_p10 }
  0x6e   : > { %p542_p1 = pnand %p541_p11, %p535_p9 }
  0x70   : > { %545 = shalt.err (!%p542_p1)
}
  0x71   : > { %s546_s4 = scalar_lea.hbm %s782_s14, 16  ;;  %s550_s18 = scalar_lea.hbm %s862_s2, 32 }
  0x72   : > { %p547_p3 = scmp.ne.s32.totalorder %s782_s14, %s546_s4  ;;  %p551_p6 = scmp.lt.s32.totalorder %s782_s14, %s862_s2 }
  0x73   : > { %p552_p12 = scmp.lt.s32.totalorder %s550_s18, %s546_s4 }
  0x74   : > { %p548_p7 = pnand %p547_p3, %p871_p0 }
  0x75   : > { %p553_p13 = por %p552_p12, %p551_p6 }
  0x76   : > { %p549_p5 = pneg %p548_p7 }
  0x78   : > { %p554_p2 = pnand %p553_p13, %p549_p5 }
  0x7a   : > { %557 = shalt.err (!%p554_p2)
}
  0x7b   : > { %386 = dma.vmem_to_hbm [thread:$0]  (%p871_p0), %s784_s5, 16, %s782_s14, %s241_s12  }
  0x7c PF: > { %s278_s28 = sand.u32 1, %s609_s9   ;;  %p872_p8 = scmp.ne.s32.totalorder %s868_s26, 0 }
  0x7d   : > { %p873_p9 = scmp.ge.s32.totalorder %s637_s16, 2  ;;  %s279_s3 = scalar_lea.sflag [#allocation6], %s278_s28 }
  0x7f   : > { %p394_p10 = pnand %p873_p9, %p872_p8 }
  0x81   : > { %p395_p4 = pneg %p394_p10 }
  0x83   : > { %599 = dma.done.wait (%p395_p4), %s279_s3, 16  }
  0x84   : > { %601 = vsyncadd (%p395_p4), %s279_s3, 4294967280  ;;  %s287_s21 = scalar_lea.sflag [#allocation9], %s278_s28 }
  0x85   : > { %603 = dma.done.wait (%p395_p4), %s287_s21, 16  }
  0x86   : > { %605 = vsyncadd (%p395_p4), %s287_s21, 4294967280  ;;  %s22_s16 = sadd.s32 1, %s637_s16   ;;  %s874_s9 = smov %s613_s10 }
  0x87   : > { %p19_p11 = scmp.ge.s32.totalorder %s22_s16, 4   ;;  %s875_s10 = smov %s617_s11 }
  0x88   : > { %s876_s11 = smov %s719_s24  ;;  %s877_s12 = smov %s625_s13 }
  0x89   : > { %s850_s13 = smov 0   ;;  %s878_s14 = smov %s633_s15 }
  0x8a   : > { %s879_s15 = smov %s881_s19  ;;  %21 = sbr.rel (!%p19_p11) target bundleno = 9 (0x9), region = 98 }
  0x8f   :  { %291 = vsyncpa [#allocation5], 1 }
  0x90   :  { %293 = vsyncpa [#allocation5 + $0x1], 1 }
  0x91   :  { %294 = vsyncpa [#allocation6], 1 }
  0x92   :  { %296 = vsyncpa [#allocation6 + $0x1], 1 }
  0x93   :  { %297 = vsyncpa [#allocation9], 1 }
  0x94   :  { %299 = vsyncpa [#allocation9 + $0x1], 1 }

</bundles_post_ra>
